<compile_context>
chip_gen: v7x
topology: tpu7x:2x2x1
jax: 0.10.0
libtpu: 0.0.40
codegen_flags: <defaults>
</compile_context>

<pallas_src>
import functools

import jax
import jax.numpy as jnp
from jax import lax
from jax.experimental import pallas as pl
from jax.experimental.pallas import tpu as pltpu


def _round_up(n: int, m: int) -> int:
    return ((n + m - 1) // m) * m


def _causal_conv1d_kernel(x_ref, prev_ref, w_ref, b_ref, o_ref, *, K, dilation, P):
    """One (batch-tile, time-tile) step of the causal conv.

    x_ref:    (TB, C_in, TL)  current time tile (lane axis = time)
    prev_ref: (TB, C_in, CW)  last CW samples of the previous tile (causal halo)
    w_ref:    (C_out, Rp)     im2col weights, Rp = round_up(K*C_in, 8)
    b_ref:    (C_out, 1)      bias (f32)
    o_ref:    (TB, C_out, TL) output tile
    """
    TB, C_in, TL = x_ref.shape
    CW = prev_ref.shape[-1]
    Rp = w_ref.shape[-1]
    R = K * C_in

    lt = pl.program_id(1)

    xt = x_ref[...]
    # Causal halo: tail of the previous time tile; zeros for the first tile
    # (the halo block is clamped to block 0 there, so mask it out).
    prev = prev_ref[...] * (lt > 0).astype(x_ref.dtype)

    lane = lax.broadcasted_iota(jnp.int32, (TB, C_in, TL), 2)

    # im2col rows: block j holds x shifted right by s_j = P - j*dilation lanes.
    # pltpu.roll runs on the XLU; the halo fix-up is a lane-index select over
    # the first CW (128-aligned) lanes only.  No concatenated window, no
    # unaligned lane slices, no K-pass accumulator RMW.
    cols = []
    for j in range(K):
        s = P - j * dilation
        if s == 0:
            cols.append(xt)
            continue
        rx = pltpu.roll(xt, shift=s, axis=2)     # rx[t] = xt[t - s]      (wraps)
        rp = pltpu.roll(prev, shift=s, axis=2)   # rp[t] = prev[CW - s + t], t < s
        head = jnp.where(lane[:, :, :CW] < s, rp, rx[:, :, :CW])
        if CW == TL:
            cols.append(head)
        else:
            cols.append(jnp.concatenate([head, rx[:, :, CW:]], axis=2))
    if Rp > R:  # pad contraction rows to a sublane multiple with zero rows
        cols.append(jnp.zeros((TB, Rp - R, TL), dtype=xt.dtype))
    col = jnp.concatenate(cols, axis=1)          # (TB, Rp, TL)

    w = w_ref[...]                               # (C_out, Rp), shared across TB
    b = b_ref[...]                               # (C_out, 1), f32
    prec = (lax.Precision.HIGHEST if w.dtype == jnp.float32
            else lax.Precision.DEFAULT)

    # One MXU contraction per batch row: (C_out, Rp) @ (Rp, TL).  The result is
    # produced directly in (C_out, TL) lane-major layout and stored once.
    for bi in range(TB):
        y = jnp.dot(w, col[bi], preferred_element_type=jnp.float32, precision=prec)
        o_ref[bi] = (y + b).astype(o_ref.dtype)


def causal_conv1d(x, weight, bias, *, dilation=1, tile_l=2048, batch_block=32,
                  compute_dtype=None):
    """Causal Conv1d matching the PyTorch module's forward.

    x:      (N, C_in, L)      NCL layout (kept end-to-end, no wrapper transposes)
    weight: (C_out, C_in, K)  PyTorch Conv1d weight layout
    bias:   (C_out,)
    returns (N, C_out, L)
    """
    N, C_in, L = x.shape
    C_out, C_in_w, K = weight.shape
    if C_in_w != C_in:
        raise ValueError("weight / input channel mismatch")
    d = int(dilation)
    P = (K - 1) * d
    if P < 1:
        # The PyTorch module slices x[..., :-padding]; padding == 0 is degenerate.
        raise ValueError("CausalConv1d requires (kernel_size - 1) * dilation >= 1")

    out_dtype = x.dtype
    cdt = jnp.dtype(compute_dtype) if compute_dtype is not None else jnp.dtype(x.dtype)

    # ---- tiling -------------------------------------------------------------
    # CW: lane-aligned causal-halo width; TL: time tile (multiple of CW and 128);
    # TB: batch rows per grid step (N is padded up rather than shrinking TB).
    CW = _round_up(P, 128)
    tl = max(128, (int(tile_l) // 128) * 128)
    TL = _round_up(max(min(_round_up(L, 128), tl), CW), CW)
    Lp = _round_up(L, TL)
    TB = max(1, min(int(batch_block), N))
    Np = _round_up(N, TB)

    xk = x.astype(cdt)
    if (Np, Lp) != (N, L):
        xk = jnp.pad(xk, ((0, Np - N), (0, 0), (0, Lp - L)))

    # Shared im2col weight: w2[o, j*C_in + c] = weight[o, c, j]; contraction rows
    # padded to a sublane multiple with zeros (matching zero rows in `col`).
    R = K * C_in
    Rp = _round_up(R, 8)
    w2 = jnp.transpose(weight, (0, 2, 1)).reshape(C_out, R).astype(cdt)
    if Rp != R:
        w2 = jnp.pad(w2, ((0, 0), (0, Rp - R)))
    b2 = bias.astype(jnp.float32).reshape(C_out, 1)

    grid = (Np // TB, Lp // TL)
    r = TL // CW  # halo blocks per time tile

    kernel = functools.partial(_causal_conv1d_kernel, K=K, dilation=d, P=P)

    itm_in = jnp.dtype(cdt).itemsize
    itm_out = jnp.dtype(out_dtype).itemsize
    cost = pl.CostEstimate(
        flops=2 * Np * C_out * C_in * K * Lp,
        transcendentals=0,
        bytes_accessed=(Np * C_in * Lp * itm_in                    # x
                        + Np * C_in * CW * (Lp // TL) * itm_in     # halo re-read
                        + C_out * Rp * itm_in + C_out * 4          # weights/bias
                        + Np * C_out * Lp * itm_out))              # output

    out = pl.pallas_call(
        kernel,
        out_shape=jax.ShapeDtypeStruct((Np, C_out, Lp), out_dtype),
        grid_spec=pltpu.PrefetchScalarGridSpec(
            num_scalar_prefetch=0,
            grid=grid,
            in_specs=[
                # current time tile
                pl.BlockSpec((TB, C_in, TL), lambda nb, lt: (nb, 0, lt)),
                # causal halo: last CW samples of the previous tile (clamped to
                # block 0 at lt == 0 and masked to zero inside the kernel)
                pl.BlockSpec((TB, C_in, CW),
                             lambda nb, lt: (nb, 0, jnp.maximum(lt * r - 1, 0))),
                # shared weights / bias (resident: constant index maps)
                pl.BlockSpec((C_out, Rp), lambda nb, lt: (0, 0)),
                pl.BlockSpec((C_out, 1), lambda nb, lt: (0, 0)),
            ],
            out_specs=pl.BlockSpec((TB, C_out, TL), lambda nb, lt: (nb, 0, lt)),
        ),
        compiler_params=pltpu.CompilerParams(
            # carry-free: all grid steps are independent -> megacore/2-TC sharding
            dimension_semantics=("parallel", "parallel"),
            vmem_limit_bytes=40 * 1024 * 1024),
        cost_estimate=cost,
    )(xk, xk, w2, b2)

    if (Np, Lp) != (N, L):
        out = out[:N, :, :L]
    return out


def _reference_causal_conv1d(x_ncl, weight_oik, bias_o, *, dilation=1):
    # Pure-JAX reference (lax conv) for correctness checks.
    K = weight_oik.shape[-1]
    P = (K - 1) * dilation
    y = lax.conv_general_dilated(
        x_ncl, weight_oik,
        window_strides=(1,),
        padding=[(P, 0)],
        rhs_dilation=(dilation,),
        dimension_numbers=("NCH", "OIH", "NCH"),
        precision=lax.Precision.HIGHEST,
    )
    return y + bias_o[None, :, None]


if __name__ == "__main__":
    key = jax.random.PRNGKey(0)

    # Case 1: small shapes consistent with the module:
    #   CausalConv1d(in_channels=4, out_channels=8, kernel_size=3, dilation=1)
    N, C_in, C_out, L, K, D = 2, 4, 8, 16, 3, 1
    k1, k2, k3, key = jax.random.split(key, 4)
    x = jax.random.normal(k1, (N, C_in, L), dtype=jnp.float32)
    w = jax.random.uniform(k2, (C_out, C_in, K), jnp.float32,
                           minval=-1.0, maxval=1.0) / jnp.sqrt(C_in * K)
    b = jax.random.uniform(k3, (C_out,), jnp.float32, minval=-0.1, maxval=0.1)

    y = jax.block_until_ready(causal_conv1d(x, w, b, dilation=D))
    y_ref = _reference_causal_conv1d(x, w, b, dilation=D)
    assert y.shape == (N, C_out, L)
    assert jnp.allclose(y, y_ref, atol=1e-4, rtol=1e-4), (
        "case1 mismatch vs reference: max abs err = "
        f"{float(jnp.max(jnp.abs(y - y_ref)))}")

    # Case 2: exercises time tiling, the cross-tile causal halo, dilation,
    # end-of-L padding (640 -> 768) and batch padding (3 -> 4 with TB = 2).
    N2, C_in2, C_out2, L2, K2, D2 = 3, 4, 8, 640, 5, 2
    k1, k2, k3, key = jax.random.split(key, 4)
    x2 = jax.random.normal(k1, (N2, C_in2, L2), dtype=jnp.float32)
    w2 = jax.random.uniform(k2, (C_out2, C_in2, K2), jnp.float32,
                            minval=-1.0, maxval=1.0) / jnp.sqrt(C_in2 * K2)
    b2 = jax.random.uniform(k3, (C_out2,), jnp.float32, minval=-0.1, maxval=0.1)

    y2 = jax.block_until_ready(
        causal_conv1d(x2, w2, b2, dilation=D2, tile_l=256, batch_block=2))
    y2_ref = _reference_causal_conv1d(x2, w2, b2, dilation=D2)
    assert y2.shape == (N2, C_out2, L2)
    assert jnp.allclose(y2, y2_ref, atol=1e-4, rtol=1e-4), (
        "case2 mismatch vs reference: max abs err = "
        f"{float(jnp.max(jnp.abs(y2 - y2_ref)))}")

    print("KERNEL_OK")
</pallas_src>

<mosaic_0001>
module attributes {stable_mosaic.version = 11 : i64} {
  func.func @_causal_conv1d_kernel(%arg0: i32, %arg1: i32, %arg2: memref<2x4x128xf32, #tpu.memory_space<vmem>>, %arg3: memref<2x4x128xf32, #tpu.memory_space<vmem>>, %arg4: memref<8x16xf32, #tpu.memory_space<vmem>>, %arg5: memref<8x1xf32, #tpu.memory_space<vmem>>, %arg6: memref<2x8x128xf32, #tpu.memory_space<vmem>>) attributes {dimension_semantics = [#tpu.dimension_semantics<parallel>, #tpu.dimension_semantics<parallel>], iteration_bounds = array<i64: 1, 1>, scalar_prefetch = 0 : i64, scratch_operands = 0 : i64, tpu.core_type = #tpu.core_type<tc>, window_params = [{transform_indices = @transform_0, window_bounds = array<i64: 2, 4, 128>}, {transform_indices = @transform_1, window_bounds = array<i64: 2, 4, 128>}, {pipeline_mode = #tpu.pipeline_mode<synchronous>, transform_indices = @transform_2, window_bounds = array<i64: 8, 16>}, {pipeline_mode = #tpu.pipeline_mode<synchronous>, transform_indices = @transform_3, window_bounds = array<i64: 8, 1>}, {transform_indices = @transform_4, window_bounds = array<i64: 2, 8, 128>}]} {
    %c0 = arith.constant 0 : index
    %c0_0 = arith.constant 0 : index
    %c0_1 = arith.constant 0 : index
    %0 = vector.load %arg2[%c0, %c0_0, %c0_1] : memref<2x4x128xf32, #tpu.memory_space<vmem>>, vector<2x4x128xf32>
    %c0_2 = arith.constant 0 : index
    %c0_3 = arith.constant 0 : index
    %c0_4 = arith.constant 0 : index
    %1 = vector.load %arg3[%c0_2, %c0_3, %c0_4] : memref<2x4x128xf32, #tpu.memory_space<vmem>>, vector<2x4x128xf32>
    %c0_i32 = arith.constant 0 : i32
    %2 = arith.cmpi sgt, %arg1, %c0_i32 : i32
    %3 = arith.extui %2 : i1 to i32
    %4 = arith.sitofp %3 : i32 to f32
    %5 = vector.broadcast %4 : f32 to vector<2x4x128xf32>
    %6 = arith.mulf %1, %5 : vector<2x4x128xf32>
    %7 = tpu.iota {dimensions = array<i32: 2>} : vector<2x4x128xi32>
    %c2_i32 = arith.constant 2 : i32
    %8 = tpu.dynamic_rotate %0 by %c2_i32 dim 2 : vector<2x4x128xf32>, i32 -> vector<2x4x128xf32>
    %c2_i32_5 = arith.constant 2 : i32
    %9 = tpu.dynamic_rotate %6 by %c2_i32_5 dim 2 : vector<2x4x128xf32>, i32 -> vector<2x4x128xf32>
    %c2_i32_6 = arith.constant 2 : i32
    %10 = vector.broadcast %c2_i32_6 : i32 to vector<2x4x128xi32>
    %11 = arith.cmpi slt, %7, %10 : vector<2x4x128xi32>
    %12 = arith.select %11, %9, %8 : vector<2x4x128xi1>, vector<2x4x128xf32>
    %c1_i32 = arith.constant 1 : i32
    %13 = tpu.dynamic_rotate %0 by %c1_i32 dim 2 : vector<2x4x128xf32>, i32 -> vector<2x4x128xf32>
    %c1_i32_7 = arith.constant 1 : i32
    %14 = tpu.dynamic_rotate %6 by %c1_i32_7 dim 2 : vector<2x4x128xf32>, i32 -> vector<2x4x128xf32>
    %c1_i32_8 = arith.constant 1 : i32
    %15 = vector.broadcast %c1_i32_8 : i32 to vector<2x4x128xi32>
    %16 = arith.cmpi slt, %7, %15 : vector<2x4x128xi32>
    %17 = arith.select %16, %14, %13 : vector<2x4x128xi1>, vector<2x4x128xf32>
    %cst = arith.constant 0.000000e+00 : f32
    %18 = vector.broadcast %cst : f32 to vector<2x4x128xf32>
    %19 = tpu.concatenate %12, %17, %0, %18 in 1 : vector<2x4x128xf32>, vector<2x4x128xf32>, vector<2x4x128xf32>, vector<2x4x128xf32> -> vector<2x16x128xf32>
    %c0_9 = arith.constant 0 : index
    %c0_10 = arith.constant 0 : index
    %20 = vector.load %arg4[%c0_9, %c0_10] : memref<8x16xf32, #tpu.memory_space<vmem>>, vector<8x16xf32>
    %c0_11 = arith.constant 0 : index
    %c0_12 = arith.constant 0 : index
    %21 = vector.load %arg5[%c0_11, %c0_12] : memref<8x1xf32, #tpu.memory_space<vmem>>, vector<8x1xf32>
    %22 = vector.extract_strided_slice %19 {offsets = [0, 0, 0], sizes = [1, 16, 128], strides = [1, 1, 1]} : vector<2x16x128xf32> to vector<1x16x128xf32>
    %23 = vector.shape_cast %22 : vector<1x16x128xf32> to vector<16x128xf32>
    %cst_13 = arith.constant dense<0.000000e+00> : vector<8x128xf32>
    %24 = tpu.matmul %20, %23, %cst_13 {dimension_numbers = #tpu.dot_dimension_numbers<[1], [0], [0], [1], [0, 0, 1, 1], [], []>, precision = #tpu.contract_precision<fp32>} : vector<8x16xf32>, vector<16x128xf32>, vector<8x128xf32> -> vector<8x128xf32>
    %25 = vector.broadcast %21 : vector<8x1xf32> to vector<8x128xf32>
    %26 = arith.addf %24, %25 : vector<8x128xf32>
    %c0_14 = arith.constant 0 : index
    %c0_15 = arith.constant 0 : index
    %c0_16 = arith.constant 0 : index
    %27 = vector.load %arg6[%c0_14, %c0_15, %c0_16] : memref<2x8x128xf32, #tpu.memory_space<vmem>>, vector<1x8x128xf32>
    %28 = vector.shape_cast %27 : vector<1x8x128xf32> to vector<8x128xf32>
    %29 = vector.shape_cast %26 : vector<8x128xf32> to vector<1x8x128xf32>
    tpu.vector_store %arg6[%c0_14, %c0_15, %c0_16], %29 {strides = array<i32>} : memref<2x8x128xf32, #tpu.memory_space<vmem>>, vector<1x8x128xf32>,
    %30 = vector.extract_strided_slice %19 {offsets = [1, 0, 0], sizes = [1, 16, 128], strides = [1, 1, 1]} : vector<2x16x128xf32> to vector<1x16x128xf32>
    %31 = vector.shape_cast %30 : vector<1x16x128xf32> to vector<16x128xf32>
    %cst_17 = arith.constant dense<0.000000e+00> : vector<8x128xf32>
    %32 = tpu.matmul %20, %31, %cst_17 {dimension_numbers = #tpu.dot_dimension_numbers<[1], [0], [0], [1], [0, 0, 1, 1], [], []>, precision = #tpu.contract_precision<fp32>} : vector<8x16xf32>, vector<16x128xf32>, vector<8x128xf32> -> vector<8x128xf32>
    %33 = vector.broadcast %21 : vector<8x1xf32> to vector<8x128xf32>
    %34 = arith.addf %32, %33 : vector<8x128xf32>
    %c1 = arith.constant 1 : index
    %c0_18 = arith.constant 0 : index
    %c0_19 = arith.constant 0 : index
    %35 = vector.load %arg6[%c1, %c0_18, %c0_19] : memref<2x8x128xf32, #tpu.memory_space<vmem>>, vector<1x8x128xf32>
    %36 = vector.shape_cast %35 : vector<1x8x128xf32> to vector<8x128xf32>
    %37 = vector.shape_cast %34 : vector<8x128xf32> to vector<1x8x128xf32>
    tpu.vector_store %arg6[%c1, %c0_18, %c0_19], %37 {strides = array<i32>} : memref<2x8x128xf32, #tpu.memory_space<vmem>>, vector<1x8x128xf32>,
    return
  }
  func.func @transform_0(%arg0: i32, %arg1: i32) -> (i32, i32, i32) {
    %c0_i32 = arith.constant 0 : i32
    %c0_i32_0 = arith.constant 0 : i32
    return %arg0, %c0_i32, %arg1 : i32, i32, i32
  }
  func.func @transform_1(%arg0: i32, %arg1: i32) -> (i32, i32, i32) {
    %c1_i32 = arith.constant 1 : i32
    %0 = arith.muli %arg1, %c1_i32 : i32
    %c1_i32_0 = arith.constant 1 : i32
    %1 = arith.subi %0, %c1_i32_0 : i32
    %c0_i32 = arith.constant 0 : i32
    %2 = arith.maxsi %1, %c0_i32 : i32
    %c0_i32_1 = arith.constant 0 : i32
    %c0_i32_2 = arith.constant 0 : i32
    return %arg0, %c0_i32_1, %2 : i32, i32, i32
  }
  func.func @transform_2(%arg0: i32, %arg1: i32) -> (i32, i32) {
    %c0_i32 = arith.constant 0 : i32
    %c0_i32_0 = arith.constant 0 : i32
    %c0_i32_1 = arith.constant 0 : i32
    return %c0_i32, %c0_i32_0 : i32, i32
  }
  func.func @transform_3(%arg0: i32, %arg1: i32) -> (i32, i32) {
    %c0_i32 = arith.constant 0 : i32
    %c0_i32_0 = arith.constant 0 : i32
    %c0_i32_1 = arith.constant 0 : i32
    return %c0_i32, %c0_i32_0 : i32, i32
  }
  func.func @transform_4(%arg0: i32, %arg1: i32) -> (i32, i32, i32) {
    %c0_i32 = arith.constant 0 : i32
    %c0_i32_0 = arith.constant 0 : i32
    return %arg0, %c0_i32, %arg1 : i32, i32, i32
  }
}

</mosaic_0001>

<bundles_post_ra>
// kernel: tpu_custom_call.1
= control target key start
LH: loop header
LB: loop body
LE: loop exit
PB: predicated region body
PF: predicated region fallthrough
CT: control target
= control target key end

     0   :  { %9 = vsyncpa [#allocation3], 0  ;;  %s1412_s0 = inlined_call_operand.vmem [shape: f32[2,4,128], index: 0, kind: input, shape index: {}]   ;;  %s1413_s1 = inlined_call_operand.hbm [shape: f32[2,4,128], index: 1, kind: input, shape index: {}]   ;;  %s1414_s2 = inlined_call_operand.vmem [shape: f32[8,16], index: 2, kind: input, shape index: {}]   ;;  %s1415_s3 = inlined_call_operand.vmem [shape: f32[8,1], index: 3, kind: input, shape index: {}]   ;;  %s1416_s4 = inlined_call_operand.hbm [shape: f32[2,8,128], index: 4, kind: output, shape index: {}]  }
   0x1   :  { %10 = vsyncpa [#allocation4], 0  ;;  %s1275_s15 = smov [#allocation2]   ;;  %s1227_s19 = scalar_lea.hbm %s1413_s1, 128 }
   0x2   :  { %s23_s16 = sshll.u32 %s1275_s15, 4  ;;  %p1228_p0 = scmp.ne.s32.totalorder %s1413_s1, %s1227_s19  ;;  %s24_s16 = int_to_ptr.vmem [resolvable:$true] %s23_s16 }
   0x3   :  { %p1231_p1 = scmp.lt.u32.totalorder %s1227_s19, %s1413_s1 }
   0x5   :  { %p1233_p2 = pnand %p1231_p1, %p1228_p0 }
   0x7   :  { %1236 = shalt.err (!%p1233_p2)
}
   0x8   :  { %s1237_s24 = scalar_lea.vmem %s24_s16, 128  ;;  %p1242_p4 = scmp.lt.s32.totalorder %s24_s16, %s24_s16 }
   0x9   :  { %p1238_p3 = scmp.ne.s32.totalorder %s24_s16, %s1237_s24  ;;  %p1243_p5 = scmp.lt.s32.totalorder %s1237_s24, %s1237_s24 }
   0xb   :  { %p1244_p6 = por %p1243_p5, %p1242_p4 }
   0xd   :  { %p1245_p7 = pnand %p1244_p6, %p1238_p3 }
   0xf   :  { %1248 = shalt.err (!%p1245_p7)
}
  0x10   :  { %s1276_s25 = smov 64   ;;  %s1277_s26 = smov 4  }
  0x11   :  { %29 = dma.hbm_to_vmem [thread:$0]  %s1413_s1, 128, %s24_s16, [#allocation3], %s1276_s25, %s1276_s25, %s1277_s26  }
  0x12   :  { %1271 = dma.done.wait [#allocation3], 128  }
  0x13   :  { %1272 = vsyncadd [#allocation3], 4294967168  ;;  %v41_v0 = vld [vmem:[%s1412_s0 + $0x4] sm:$0xf]  ;;  %v40_v1 = vld [vmem:[%s1412_s0] sm:$0xf]  ;;  %v50_v11 = vlaneseq }
  0x14   :  { %v42_v2 = vld [vmem:[#allocation2] sm:$0xf]  ;;  %s1278_s7 = smov 2   ;;  %s1279_s8 = smov 1   ;;  %v43_v4 = vld [vmem:[#allocation2 + $0x4] sm:$0xf] }
  0x15   :  { %54 = vrot.lane.b32.xlu1 %v41_v0, %s1278_s7  ;;  %63 = vrot.lane.b32.xlu0 %v40_v1, %s1279_s8  ;;  %v48_v3 = vmul.f32 0.0, %v42_v2  ;;  %v49_v5 = vmul.f32 0.0, %v43_v4  ;;  %v1280_v6 = vmov 0.0|0.0   ;;  %vm1281_vm0 = vmmov 0   ;;  %v86_v8 = vld [vmem:[%s1415_s3] sm:$0xff] }
  0x16   :  { %1156 = vmatprep.subr.bf16.mxu0 %v1280_v6  ;;  %1174 = vmatprep.subr.bf16.mxu1 %v1280_v6  ;;  %v1282_v7 = vmov 0.0   ;;  %v1283_v9 = vmov 0   ;;  %v85_v10 = vld [vmem:[%s1414_s2] sm:$0xff]  ;;  %vm92_vm1 = vcmask 130048   ;;  %vm80_vm2 = vcmask 1043456   ;;  %s1284_s2 = smov [#allocation5]  }
  0x17   :  { %1076 = vmatprep.mubr.msk.f32.mxu0 %vm1281_vm0, %v1282_v7  ;;  %1118 = vmatprep.mubr.msk.f32.mxu1 %vm1281_vm0, %v1282_v7  ;;  %v94_v12 = vsel %vm92_vm1, %v85_v10, 0  ;;  %v84_v15 = vsel %vm80_vm2, %v41_v0, 0.0  ;;  %v83_v16 = vsel %vm80_vm2, %v40_v1, 0.0  ;;  %v51_v17 = vand.u32 127, %v50_v11  ;;  %s1022_s3 = sshll.u32 %s1284_s2, 4  ;;  %s1023_s3 = int_to_ptr.vmem [resolvable:$true] %s1022_s3 }
  0x18   :  { %1226 = vset.pattern.permute.xlu0 %v1283_v9  ;;  %v1344_v18 = vand.u32 4294901760, %v94_v12  ;;  %v560_v19 = vand.u32 4294901760, %v84_v15  ;;  %v100_v20 = vand.u32 4294901760, %v83_v16  ;;  %s1249_s11 = scalar_lea.vmem %s1023_s3, 256  ;;  %p1254_p9 = scmp.lt.s32.totalorder %s1023_s3, %s1023_s3 }
  0x19   :  { %67 = vrot.lane.b32.xlu1 %v48_v3, %s1279_s8  ;;  %65 = vrot.lane.b32.xlu0 %v41_v0, %s1279_s8  ;;  %vm71_vm3 = vcmp.lt.s32.totalorder %v51_v17, 1  ;;  %vm60_vm4 = vcmp.lt.s32.totalorder %v51_v17, 2  ;;  %p1250_p8 = scmp.ne.s32.totalorder %s1023_s3, %s1249_s11  ;;  %p1255_p10 = scmp.lt.s32.totalorder %s1249_s11, %s1249_s11 }
  0x1a   :  { %v164_v23 = vsub.f32 %v94_v12, %v1344_v18  ;;  %v1347_v24 = vsub.f32 %v84_v15, %v560_v19  ;;  %v1349_v25 = vsub.f32 %v83_v16, %v100_v20 }
  0x1b   :  { %p1256_p11 = por %p1255_p10, %p1254_p9 }
  0x1c   :  { %v1351_v30 = vand.u32 4294901760, %v164_v23  ;;  %v643_v31 = vand.u32 4294901760, %v1347_v24  ;;  %v183_v32 = vand.u32 4294901760, %v1349_v25 }
  0x1d   :  { %69 = vrot.lane.b32.xlu1 %v49_v5, %s1279_s8  ;;  %52 = vrot.lane.b32.xlu0 %v40_v1, %s1278_s7  ;;  %p1257_p12 = pnand %p1256_p11, %p1250_p8 }
  0x1e   :  { %v166_v41 = vsub.f32 %v164_v23, %v1351_v30  ;;  %v644_v44 = vsub.f32 %v1347_v24, %v643_v31  ;;  %v184_v45 = vsub.f32 %v1349_v25, %v183_v32 }
  0x20   :  { %v167_v50 = vand.u32 4294901760, %v166_v41  ;;  %v185_v55 = vand.u32 4294901760, %v184_v45  ;;  %v645_v56 = vand.u32 4294901760, %v644_v44 }
  0x21   :  { %58 = vrot.lane.b32.xlu1 %v49_v5, %s1278_s7  ;;  %56 = vrot.lane.b32.xlu0 %v48_v3, %s1278_s7 }
  0x25   :  { %89 = vperm.xlu0 %1226, %v86_v8  }
  0x87   :  { %v55_v13 = vpop.permute.xlu1 %54  ;;  %v64_v14 = vpop.permute.xlu0 %63 }
  0x8b   :  { %v68_v21 = vpop.permute.xlu1 %67  ;;  %v66_v22 = vpop.permute.xlu0 %65 }
  0x8c   :  { %v72_v28 = vsel %vm71_vm3, %v68_v21, %v64_v14 }
  0x8d   :  { %v76_v33 = vrot.slane %v72_v28, 4 }
  0x8f   :  { %v70_v26 = vpop.permute.xlu1 %69  ;;  %v53_v27 = vpop.permute.xlu0 %52 }
  0x90   :  { %v73_v29 = vsel %vm71_vm3, %v70_v26, %v66_v22 }
  0x91   :  { %v77_v34 = vrot.slane %v73_v29, 4 }
  0x93   :  { %v59_v35 = vpop.permute.xlu1 %58  ;;  %v57_v36 = vpop.permute.xlu0 %56 }
  0x94   :  { %v62_v37 = vsel %vm60_vm4, %v59_v35, %v55_v13  ;;  %v61_v38 = vsel %vm60_vm4, %v57_v36, %v53_v27 }
  0x95   :  { %v82_v39 = vsel %vm80_vm2, %v62_v37, %v77_v34  ;;  %v81_v40 = vsel %vm80_vm2, %v61_v38, %v76_v33 }
  0x96   :  { %v557_v42 = vand.u32 4294901760, %v82_v39  ;;  %v97_v43 = vand.u32 4294901760, %v81_v40 }
  0x98   :  { %v635_v46 = vsub.f32 %v82_v39, %v557_v42  ;;  %v175_v47 = vsub.f32 %v81_v40, %v97_v43  ;;  %v1157_v48 = vpack.c.bf16 %v100_v20, %v97_v43  ;;  %v1175_v49 = vpack.c.bf16 %v560_v19, %v557_v42 }
  0x9a   :  { %v636_v51 = vand.u32 4294901760, %v635_v46  ;;  %v176_v52 = vand.u32 4294901760, %v175_v47  ;;  %1158 = vmatpush3.bf16.msra.mxu0 %v1157_v48  ;;  %1176 = vmatpush3.bf16.msra.mxu1 %v1175_v49  ;;  %v1163_v61 = vpack.c.bf16 %v1349_v25, %v175_v47  ;;  %v1181_v62 = vpack.c.bf16 %v1347_v24, %v635_v46 }
  0x9b   :  { %1159 = vmatprep.subr.bf16.mxu0 %v1280_v6  ;;  %1177 = vmatprep.subr.bf16.mxu1 %v1280_v6 }
  0x9c   :  { %v637_v53 = vsub.f32 %v635_v46, %v636_v51  ;;  %v177_v54 = vsub.f32 %v175_v47, %v176_v52  ;;  %v1169_v63 = vpack.c.bf16 %v183_v32, %v176_v52  ;;  %v1187_v0 = vpack.c.bf16 %v643_v31, %v636_v51 }
  0x9d   :  { %1077 = vmatmul.mubr.f32.vlgmr.msra.gmra.mrb[0].mxu0 %v167_v50  ;;  %1119 = vmatmul.mubr.f32.vlgmr.msra.gmra.mrb[0].mxu1 %v167_v50 }
  0x9e   :  { %v178_v57 = vand.u32 4294901760, %v177_v54  ;;  %v638_v58 = vand.u32 4294901760, %v637_v53  ;;  %1083 = vmatprep.mubr.msk.f32.mxu0 %vm1281_vm0, %v1282_v7  ;;  %1125 = vmatprep.mubr.msk.f32.mxu1 %vm1281_vm0, %v1282_v7 }
  0xa0   :  { %v1160_v59 = vpack.c.bf16 %v185_v55, %v178_v57  ;;  %v1178_v60 = vpack.c.bf16 %v645_v56, %v638_v58 }
  0xa2   :  { %1161 = vmatpush3.bf16.msra.mxu0 %v1160_v59  ;;  %1179 = vmatpush3.bf16.msra.mxu1 %v1178_v60 }
  0xa3   :  { %1162 = vmatprep.subr.bf16.mxu0 %v1280_v6  ;;  %1180 = vmatprep.subr.bf16.mxu1 %v1280_v6 }
  0xa4   :  { %v90_v1 = vpop.permute.xlu0 %89 }
  0xa5   :  { %1084 = vmatmul.mubr.f32.vlgmr.msra.gmra.mrb[0].mxu0 %v1344_v18  ;;  %1126 = vmatmul.mubr.f32.vlgmr.msra.gmra.mrb[0].mxu1 %v1344_v18 }
  0xa6   :  { %1164 = vmatpush3.bf16.msra.mxu0 %v1163_v61  ;;  %1182 = vmatpush3.bf16.msra.mxu1 %v1181_v62 }
  0xa7   :  { %1090 = vmatprep.mubr.msk.f32.mxu0 %vm1281_vm0, %v1282_v7  ;;  %1165 = vmatprep.subr.bf16.mxu0 %v1280_v6 }
  0xa8   :  { %1132 = vmatprep.mubr.msk.f32.mxu1 %vm1281_vm0, %v1282_v7  ;;  %1183 = vmatprep.subr.bf16.mxu1 %v1280_v6 }
  0xad   :  { %1091 = vmatmul.mubr.f32.vlgmr.msra.gmra.mrb[0].mxu0 %v164_v23  ;;  %1133 = vmatmul.mubr.f32.vlgmr.msra.gmra.mrb[0].mxu1 %v164_v23 }
  0xae   :  { %1167 = vmatpush3.bf16.msra.mxu0 %v1157_v48  ;;  %1185 = vmatpush3.bf16.msra.mxu1 %v1175_v49 }
  0xaf   :  { %1097 = vmatprep.mubr.msk.f32.mxu0 %vm1281_vm0, %v1282_v7  ;;  %1168 = vmatprep.subr.bf16.mxu0 %v1280_v6 }
  0xb0   :  { %1139 = vmatprep.mubr.msk.f32.mxu1 %vm1281_vm0, %v1282_v7  ;;  %1186 = vmatprep.subr.bf16.mxu1 %v1280_v6 }
  0xb5   :  { %1098 = vmatmul.mubr.f32.vlgmr.msra.gmra.mrb[0].mxu0 %v1351_v30  ;;  %1140 = vmatmul.mubr.f32.vlgmr.msra.gmra.mrb[0].mxu1 %v1351_v30 }
  0xb6   :  { %1170 = vmatpush3.bf16.msra.mxu0 %v1169_v63  ;;  %1188 = vmatpush3.bf16.msra.mxu1 %v1187_v0 }
  0xb7   :  { %1104 = vmatprep.mubr.msk.f32.mxu0 %vm1281_vm0, %v1282_v7  ;;  %1171 = vmatprep.subr.bf16.mxu0 %v1280_v6 }
  0xb8   :  { %1146 = vmatprep.mubr.msk.f32.mxu1 %vm1281_vm0, %v1282_v7  ;;  %1189 = vmatprep.subr.bf16.mxu1 %v1280_v6 }
  0xbd   :  { %1105 = vmatmul.mubr.f32.vlgmr.msra.gmra.mrb[0].mxu0 %v1344_v18  ;;  %1147 = vmatmul.mubr.f32.vlgmr.msra.gmra.mrb[0].mxu1 %v1344_v18 }
  0xbe   :  { %1173 = vmatpush3.bf16.msra.mxu0 %v1157_v48  ;;  %1191 = vmatpush3.bf16.msra.mxu1 %v1175_v49 }
  0xbf   :  { %1111 = vmatprep.mubr.msk.f32.mxu0 %vm1281_vm0, %v1282_v7  ;;  %1153 = vmatprep.mubr.msk.f32.mxu1 %vm1281_vm0, %v1282_v7 }
  0xc5   :  { %1112 = vmatmul.mubr.f32.vlgmr.msra.gmra.mrb[0].mxu0 %v1344_v18  ;;  %1154 = vmatmul.mubr.f32.vlgmr.msra.gmra.mrb[0].mxu1 %v1344_v18 }
 0x198   :  { %v1011_v2 = vpop.f32.mrb[0].mxu1  ;;  %v551_v3 = vpop.f32.mrb[0].mxu0 }
 0x199   :  { %v1193_v4 = vadd.f32 %v1011_v2, %v90_v1  ;;  %v1192_v5 = vadd.f32 %v551_v3, %v90_v1  ;;  %v1113_v6 = vpop.f32.mrb[1].mxu0  ;;  %v1155_v8 = vpop.f32.mrb[1].mxu1 }
 0x19b   :  { %1016 = vst [vmem:[#allocation5 + $0x8] sm:$0xff] %v1193_v4  ;;  %555 = vst [vmem:[#allocation5] sm:$0xff] %v1192_v5 }
 0x19c   :  { %1260 = shalt.err (!%p1257_p12)
}
 0x19d   :  { %s1261_s14 = scalar_lea.hbm %s1416_s4, 256 }
 0x19e   :  { %p1262_p13 = scmp.ne.s32.totalorder %s1416_s4, %s1261_s14  ;;  %p1265_p0 = scmp.lt.u32.totalorder %s1261_s14, %s1416_s4 }
 0x1a0   :  { %p1267_p1 = pnand %p1265_p0, %p1262_p13 }
 0x1a2   :  { %1270 = shalt.err (!%p1267_p1)
}
 0x1a3   :  { %s1285_s19 = smov 128   ;;  %s1286_s20 = smov 8  }
 0x1a4   :  { %1028 = dma.vmem_to_hbm [thread:$0]  %s1023_s3, 256, %s1416_s4, [#allocation4], %s1285_s19, %s1285_s19, %s1286_s20  }
 0x1a5   :  { %1273 = dma.done.wait [#allocation4], 256  }
 0x1a6   :  { %1274 = vsyncadd [#allocation4], 4294967040 }
 0x1a7   :  { %1032 = vsyncpa [#allocation3], 1 }
 0x1a8   :  { %1033 = vsyncpa [#allocation4], 1 }

</bundles_post_ra>
